<compile_context>
chip_gen: v7x
topology: tpu7x:2x2x1
jax: 0.10.0
libtpu: 0.0.40
codegen_flags: <defaults>
</compile_context>

<pallas_src>
import functools

import jax
import jax.numpy as jnp
from jax import lax
from jax.experimental import pallas as pl
from jax.experimental.pallas import tpu as pltpu

_MIB = 1024 * 1024


def _round_up(x: int, m: int) -> int:
    return (x + m - 1) // m * m


def _vmem_caps():
    """Generation-aware (vmem_limit_bytes, per-step VMEM byte budget)."""
    try:
        cap = int(getattr(pltpu.get_tpu_info(), "vmem_capacity_bytes", 128 * _MIB))
    except Exception:
        cap = 128 * _MIB
    if cap <= 64 * _MIB:            # v7x-class: 64 MiB per TensorCore
        return 48 * _MIB, 16 * _MIB
    return 100 * _MIB, 24 * _MIB    # v5e / v6e: 128 MiB physical VMEM


def _colbert_kernel(q_ref, dpos_ref, dneg_ref, out_ref, *, true_b, tile_b,
                    n_negs, ragged):
    """One batch tile of the ColBERT multiple-negatives CE loss.

    q_ref    : (TILE_B, D)       query embeddings
    dpos_ref : (TILE_B, D)       positive doc embeddings
    dneg_ref : (N, TILE_B, D)    negative doc embeddings (native layout)
    out_ref  : (1, 8, 128) VMEM  per-tile partial loss sum (broadcast)
    """
    eps2 = 1e-24  # F.normalize eps=1e-12, applied as a clamp on ||x||^2

    # dot-then-rsqrt normalization: scalar rsqrt per vector instead of full
    # (TB, D) divides; rsqrt goes to the EUP (its own VLIW slot).
    q = q_ref[...].astype(jnp.float32)                                             # (TB, D)
    inv_q = lax.rsqrt(jnp.maximum(jnp.sum(q * q, axis=-1, keepdims=True), eps2))   # (TB, 1)

    dp = dpos_ref[...].astype(jnp.float32)                                         # (TB, D)
    inv_p = lax.rsqrt(jnp.maximum(jnp.sum(dp * dp, axis=-1, keepdims=True), eps2))
    cos_pos = jnp.sum(q * dp, axis=-1, keepdims=True) * inv_q * inv_p              # (TB, 1)

    # Cross-entropy with target class 0 (the positive):
    #   loss_b = log(sum_c exp(score_bc)) - cos_pos_b
    # Cosines are bounded in [-1, 1] so exp cannot overflow -> no max-shift.
    denom = jnp.exp(cos_pos)                                                        # (TB, 1)

    # Static, unrolled loop over negatives: each slice is a fully sublane-dense
    # (TB, D) block (no N-on-sublanes padding, no (TB, N, D) temporaries).
    for n in range(n_negs):
        dn = dneg_ref[n].astype(jnp.float32)                                        # (TB, D)
        inv_n = lax.rsqrt(jnp.maximum(jnp.sum(dn * dn, axis=-1, keepdims=True), eps2))
        cos_n = jnp.sum(q * dn, axis=-1, keepdims=True) * inv_q * inv_n             # (TB, 1)
        denom = denom + jnp.exp(cos_n)

    per_row = jnp.log(denom) - cos_pos                                              # (TB, 1)

    if ragged:
        # Mask padding rows of the final (ragged) tile before reducing so
        # garbage VMEM rows (possibly NaN/Inf) never reach the sum.
        pid = pl.program_id(0)
        last = pl.num_programs(0) - 1
        limit = jnp.where(pid == last, true_b - last * tile_b, tile_b)
        row_ids = lax.broadcasted_iota(jnp.int32, (tile_b, 1), 0)
        per_row = jnp.where(row_ids < limit, per_row, 0.0)

    tile_sum = jnp.sum(per_row)
    # Lane-dense output block: broadcast the tile's partial sum; the wrapper
    # reads one element per tile.
    out_ref[...] = jnp.broadcast_to(tile_sum, out_ref.shape).astype(jnp.float32)


def colbert_multiple_negs_loss(q_emb, dpos_emb, dneg_emb, *, tile_b=None):
    """q_emb: (B, D), dpos_emb: (B, D), dneg_emb: (N, B, D) -> scalar CE loss."""
    N, B, D = dneg_emb.shape
    assert q_emb.shape == (B, D) and dpos_emb.shape == (B, D)

    vmem_limit, step_budget = _vmem_caps()

    if tile_b is None:
        itemsize = jnp.dtype(q_emb.dtype).itemsize
        Dp = _round_up(D, 128)  # lane dim rounds up to 128 inside VMEM
        # Double-buffered input slabs (q + dpos + N negs) plus a few f32
        # temporaries (q upcast, one per-n slice, small (TB,1) vectors).
        bytes_per_row = 2 * (2 + N) * Dp * itemsize + 3 * Dp * 4
        tile_b = (step_budget // bytes_per_row) // 8 * 8
        tile_b = max(8, min(tile_b, 2048))

    if tile_b >= B:
        tile_b = B                    # single tile: block dims == full array dims
    else:
        tile_b = max(8, (tile_b // 8) * 8)   # sublane multiple for partial tiles

    num_tiles = (B + tile_b - 1) // tile_b
    ragged = (B % tile_b) != 0

    kernel = functools.partial(_colbert_kernel, true_b=B, tile_b=tile_b,
                               n_negs=N, ragged=ragged)

    partials = pl.pallas_call(
        kernel,
        out_shape=jax.ShapeDtypeStruct((num_tiles, 8, 128), jnp.float32),
        grid_spec=pltpu.PrefetchScalarGridSpec(
            num_scalar_prefetch=0,
            grid=(num_tiles,),
            in_specs=[
                pl.BlockSpec((tile_b, D), lambda i: (i, 0)),
                pl.BlockSpec((tile_b, D), lambda i: (i, 0)),
                # Native (N, B, D) layout: last two block dims are (tile_b, D).
                pl.BlockSpec((N, tile_b, D), lambda i: (0, i, 0)),
            ],
            out_specs=pl.BlockSpec((1, 8, 128), lambda i: (i, 0, 0)),
        ),
        compiler_params=pltpu.CompilerParams(
            dimension_semantics=("parallel",),   # independent tiles -> dual-TC on v7x
            vmem_limit_bytes=vmem_limit,
        ),
    )(q_emb, dpos_emb, dneg_emb)

    # Each tile's (8,128) block holds its partial sum broadcast; pick one
    # element per tile and finish the mean outside the kernel (num_tiles vals).
    return jnp.sum(partials[:, 0, 0]) / B


def _reference_loss(q, dpos, dnegs):
    """Pure-JAX reference mirroring the PyTorch module."""
    def norm(x):
        return x / jnp.maximum(jnp.linalg.norm(x, axis=-1, keepdims=True), 1e-12)

    qn, dpn, dnn = norm(q), norm(dpos), norm(dnegs)
    cos_pos = jnp.sum(qn * dpn, axis=-1)               # (B,)
    cos_neg = jnp.einsum("bd,nbd->bn", qn, dnn)        # (B, N)
    scores = jnp.concatenate([cos_pos[:, None], cos_neg], axis=1)
    return jnp.mean(jax.nn.logsumexp(scores, axis=1) - scores[:, 0])


if __name__ == "__main__":
    key = jax.random.PRNGKey(0)

    # Case 1: the small shape from the module spec (single tile, full-dim blocks).
    B, D, N = 4, 32, 3
    kq, kp, kn = jax.random.split(key, 3)
    q_emb = jax.random.normal(kq, (B, D), dtype=jnp.float32)
    dpos_emb = jax.random.normal(kp, (B, D), dtype=jnp.float32)
    dneg_emb = jax.random.normal(kn, (N, B, D), dtype=jnp.float32)

    loss = jax.block_until_ready(colbert_multiple_negs_loss(q_emb, dpos_emb, dneg_emb))
    ref = jax.block_until_ready(_reference_loss(q_emb, dpos_emb, dneg_emb))
    assert jnp.allclose(loss, ref, rtol=1e-5, atol=1e-5), (loss, ref)

    # Case 2: multi-tile grid with a ragged final tile (B=20, tile_b=8).
    B2, D2, N2 = 20, 96, 3
    kq2, kp2, kn2 = jax.random.split(jax.random.PRNGKey(1), 3)
    q2 = jax.random.normal(kq2, (B2, D2), dtype=jnp.float32)
    p2 = jax.random.normal(kp2, (B2, D2), dtype=jnp.float32)
    n2 = jax.random.normal(kn2, (N2, B2, D2), dtype=jnp.float32)

    loss2 = jax.block_until_ready(colbert_multiple_negs_loss(q2, p2, n2, tile_b=8))
    ref2 = jax.block_until_ready(_reference_loss(q2, p2, n2))
    assert jnp.allclose(loss2, ref2, rtol=1e-5, atol=1e-5), (loss2, ref2)

    # Case 3: bf16 embeddings (half HBM traffic); per-slice f32 upcast in-kernel.
    B3, D3, N3 = 16, 128, 2
    kq3, kp3, kn3 = jax.random.split(jax.random.PRNGKey(2), 3)
    q3 = jax.random.normal(kq3, (B3, D3), dtype=jnp.float32).astype(jnp.bfloat16)
    p3 = jax.random.normal(kp3, (B3, D3), dtype=jnp.float32).astype(jnp.bfloat16)
    n3 = jax.random.normal(kn3, (N3, B3, D3), dtype=jnp.float32).astype(jnp.bfloat16)

    loss3 = jax.block_until_ready(colbert_multiple_negs_loss(q3, p3, n3))
    ref3 = jax.block_until_ready(
        _reference_loss(q3.astype(jnp.float32), p3.astype(jnp.float32),
                        n3.astype(jnp.float32)))
    assert jnp.allclose(loss3, ref3, rtol=1e-3, atol=1e-3), (loss3, ref3)

    print("KERNEL_OK")
</pallas_src>

<mosaic_0001>
module attributes {stable_mosaic.version = 11 : i64} {
  func.func @_colbert_kernel(%arg0: i32, %arg1: memref<4x32xf32, #tpu.memory_space<vmem>>, %arg2: memref<4x32xf32, #tpu.memory_space<vmem>>, %arg3: memref<3x4x32xf32, #tpu.memory_space<vmem>>, %arg4: memref<1x8x128xf32, #tpu.memory_space<vmem>>) attributes {dimension_semantics = [#tpu.dimension_semantics<parallel>], iteration_bounds = array<i64: 1>, scalar_prefetch = 0 : i64, scratch_operands = 0 : i64, tpu.core_type = #tpu.core_type<tc>, window_params = [{transform_indices = @transform_0, window_bounds = array<i64: 4, 32>}, {transform_indices = @transform_1, window_bounds = array<i64: 4, 32>}, {transform_indices = @transform_2, window_bounds = array<i64: 3, 4, 32>}, {transform_indices = @transform_3, window_bounds = array<i64: 1, 8, 128>}]} {
    %c0 = arith.constant 0 : index
    %c0_0 = arith.constant 0 : index
    %0 = vector.load %arg1[%c0, %c0_0] : memref<4x32xf32, #tpu.memory_space<vmem>>, vector<4x32xf32>
    %1 = arith.mulf %0, %0 : vector<4x32xf32>
    %cst = arith.constant dense<0.000000e+00> : vector<4xf32>
    %2 = vector.multi_reduction <add>, %1, %cst [1] : vector<4x32xf32> to vector<4xf32>
    %3 = vector.shape_cast %2 : vector<4xf32> to vector<4x1xf32>
    %cst_1 = arith.constant 1.000000e-24 : f32
    %4 = vector.broadcast %cst_1 : f32 to vector<4x1xf32>
    %5 = arith.maximumf %3, %4 : vector<4x1xf32>
    %6 = math.rsqrt %5 : vector<4x1xf32>
    %c0_2 = arith.constant 0 : index
    %c0_3 = arith.constant 0 : index
    %7 = vector.load %arg2[%c0_2, %c0_3] : memref<4x32xf32, #tpu.memory_space<vmem>>, vector<4x32xf32>
    %8 = arith.mulf %7, %7 : vector<4x32xf32>
    %cst_4 = arith.constant dense<0.000000e+00> : vector<4xf32>
    %9 = vector.multi_reduction <add>, %8, %cst_4 [1] : vector<4x32xf32> to vector<4xf32>
    %10 = vector.shape_cast %9 : vector<4xf32> to vector<4x1xf32>
    %cst_5 = arith.constant 1.000000e-24 : f32
    %11 = vector.broadcast %cst_5 : f32 to vector<4x1xf32>
    %12 = arith.maximumf %10, %11 : vector<4x1xf32>
    %13 = math.rsqrt %12 : vector<4x1xf32>
    %14 = arith.mulf %0, %7 : vector<4x32xf32>
    %cst_6 = arith.constant dense<0.000000e+00> : vector<4xf32>
    %15 = vector.multi_reduction <add>, %14, %cst_6 [1] : vector<4x32xf32> to vector<4xf32>
    %16 = vector.shape_cast %15 : vector<4xf32> to vector<4x1xf32>
    %17 = arith.mulf %16, %6 : vector<4x1xf32>
    %18 = arith.mulf %17, %13 : vector<4x1xf32>
    %19 = math.exp %18 : vector<4x1xf32>
    %c0_7 = arith.constant 0 : index
    %c0_8 = arith.constant 0 : index
    %c0_9 = arith.constant 0 : index
    %20 = vector.load %arg3[%c0_7, %c0_8, %c0_9] : memref<3x4x32xf32, #tpu.memory_space<vmem>>, vector<1x4x32xf32>
    %21 = vector.shape_cast %20 : vector<1x4x32xf32> to vector<4x32xf32>
    %22 = arith.mulf %21, %21 : vector<4x32xf32>
    %cst_10 = arith.constant dense<0.000000e+00> : vector<4xf32>
    %23 = vector.multi_reduction <add>, %22, %cst_10 [1] : vector<4x32xf32> to vector<4xf32>
    %24 = vector.shape_cast %23 : vector<4xf32> to vector<4x1xf32>
    %cst_11 = arith.constant 1.000000e-24 : f32
    %25 = vector.broadcast %cst_11 : f32 to vector<4x1xf32>
    %26 = arith.maximumf %24, %25 : vector<4x1xf32>
    %27 = math.rsqrt %26 : vector<4x1xf32>
    %28 = arith.mulf %0, %21 : vector<4x32xf32>
    %cst_12 = arith.constant dense<0.000000e+00> : vector<4xf32>
    %29 = vector.multi_reduction <add>, %28, %cst_12 [1] : vector<4x32xf32> to vector<4xf32>
    %30 = vector.shape_cast %29 : vector<4xf32> to vector<4x1xf32>
    %31 = arith.mulf %30, %6 : vector<4x1xf32>
    %32 = arith.mulf %31, %27 : vector<4x1xf32>
    %33 = math.exp %32 : vector<4x1xf32>
    %34 = arith.addf %19, %33 : vector<4x1xf32>
    %c1 = arith.constant 1 : index
    %c0_13 = arith.constant 0 : index
    %c0_14 = arith.constant 0 : index
    %35 = vector.load %arg3[%c1, %c0_13, %c0_14] : memref<3x4x32xf32, #tpu.memory_space<vmem>>, vector<1x4x32xf32>
    %36 = vector.shape_cast %35 : vector<1x4x32xf32> to vector<4x32xf32>
    %37 = arith.mulf %36, %36 : vector<4x32xf32>
    %cst_15 = arith.constant dense<0.000000e+00> : vector<4xf32>
    %38 = vector.multi_reduction <add>, %37, %cst_15 [1] : vector<4x32xf32> to vector<4xf32>
    %39 = vector.shape_cast %38 : vector<4xf32> to vector<4x1xf32>
    %cst_16 = arith.constant 1.000000e-24 : f32
    %40 = vector.broadcast %cst_16 : f32 to vector<4x1xf32>
    %41 = arith.maximumf %39, %40 : vector<4x1xf32>
    %42 = math.rsqrt %41 : vector<4x1xf32>
    %43 = arith.mulf %0, %36 : vector<4x32xf32>
    %cst_17 = arith.constant dense<0.000000e+00> : vector<4xf32>
    %44 = vector.multi_reduction <add>, %43, %cst_17 [1] : vector<4x32xf32> to vector<4xf32>
    %45 = vector.shape_cast %44 : vector<4xf32> to vector<4x1xf32>
    %46 = arith.mulf %45, %6 : vector<4x1xf32>
    %47 = arith.mulf %46, %42 : vector<4x1xf32>
    %48 = math.exp %47 : vector<4x1xf32>
    %49 = arith.addf %34, %48 : vector<4x1xf32>
    %c2 = arith.constant 2 : index
    %c0_18 = arith.constant 0 : index
    %c0_19 = arith.constant 0 : index
    %50 = vector.load %arg3[%c2, %c0_18, %c0_19] : memref<3x4x32xf32, #tpu.memory_space<vmem>>, vector<1x4x32xf32>
    %51 = vector.shape_cast %50 : vector<1x4x32xf32> to vector<4x32xf32>
    %52 = arith.mulf %51, %51 : vector<4x32xf32>
    %cst_20 = arith.constant dense<0.000000e+00> : vector<4xf32>
    %53 = vector.multi_reduction <add>, %52, %cst_20 [1] : vector<4x32xf32> to vector<4xf32>
    %54 = vector.shape_cast %53 : vector<4xf32> to vector<4x1xf32>
    %cst_21 = arith.constant 1.000000e-24 : f32
    %55 = vector.broadcast %cst_21 : f32 to vector<4x1xf32>
    %56 = arith.maximumf %54, %55 : vector<4x1xf32>
    %57 = math.rsqrt %56 : vector<4x1xf32>
    %58 = arith.mulf %0, %51 : vector<4x32xf32>
    %cst_22 = arith.constant dense<0.000000e+00> : vector<4xf32>
    %59 = vector.multi_reduction <add>, %58, %cst_22 [1] : vector<4x32xf32> to vector<4xf32>
    %60 = vector.shape_cast %59 : vector<4xf32> to vector<4x1xf32>
    %61 = arith.mulf %60, %6 : vector<4x1xf32>
    %62 = arith.mulf %61, %57 : vector<4x1xf32>
    %63 = math.exp %62 : vector<4x1xf32>
    %64 = arith.addf %49, %63 : vector<4x1xf32>
    %65 = math.log %64 : vector<4x1xf32>
    %66 = arith.subf %65, %18 : vector<4x1xf32>
    %67 = vector.shape_cast %66 : vector<4x1xf32> to vector<1x4x1xf32>
    %cst_23 = arith.constant dense<0.000000e+00> : vector<1xf32>
    %68 = vector.multi_reduction <add>, %67, %cst_23 [1, 2] : vector<1x4x1xf32> to vector<1xf32>
    %69 = vector.shape_cast %68 : vector<1xf32> to vector<1x1x1xf32>
    %70 = vector.extract %69[0, 0, 0] : f32 from vector<1x1x1xf32>
    %71 = vector.broadcast %70 : f32 to vector<1x8x128xf32>
    %c0_24 = arith.constant 0 : index
    %c0_25 = arith.constant 0 : index
    %c0_26 = arith.constant 0 : index
    %72 = vector.load %arg4[%c0_24, %c0_25, %c0_26] : memref<1x8x128xf32, #tpu.memory_space<vmem>>, vector<1x8x128xf32>
    tpu.vector_store %arg4[%c0_24, %c0_25, %c0_26], %71 {strides = array<i32>} : memref<1x8x128xf32, #tpu.memory_space<vmem>>, vector<1x8x128xf32>,
    return
  }
  func.func @transform_0(%arg0: i32) -> (i32, i32) {
    %c0_i32 = arith.constant 0 : i32
    %c0_i32_0 = arith.constant 0 : i32
    return %arg0, %c0_i32 : i32, i32
  }
  func.func @transform_1(%arg0: i32) -> (i32, i32) {
    %c0_i32 = arith.constant 0 : i32
    %c0_i32_0 = arith.constant 0 : i32
    return %arg0, %c0_i32 : i32, i32
  }
  func.func @transform_2(%arg0: i32) -> (i32, i32, i32) {
    %c0_i32 = arith.constant 0 : i32
    %c0_i32_0 = arith.constant 0 : i32
    %c0_i32_1 = arith.constant 0 : i32
    return %c0_i32, %arg0, %c0_i32_0 : i32, i32, i32
  }
  func.func @transform_3(%arg0: i32) -> (i32, i32, i32) {
    %c0_i32 = arith.constant 0 : i32
    %c0_i32_0 = arith.constant 0 : i32
    %c0_i32_1 = arith.constant 0 : i32
    return %arg0, %c0_i32, %c0_i32_0 : i32, i32, i32
  }
}

</mosaic_0001>

<bundles_post_ra>
// kernel: tpu_custom_call.1
= control target key start
LH: loop header
LB: loop body
LE: loop exit
PB: predicated region body
PF: predicated region fallthrough
CT: control target
= control target key end

     0   :  { %8 = vsyncpa [#allocation3], 0  ;;  %s362_s0 = inlined_call_operand.hbm [shape: f32[4,32], index: 0, kind: input, shape index: {}]   ;;  %s363_s1 = inlined_call_operand.hbm [shape: f32[4,32], index: 1, kind: input, shape index: {}]   ;;  %s364_s2 = inlined_call_operand.hbm [shape: f32[3,4,32], index: 2, kind: input, shape index: {}]   ;;  %s365_s3 = inlined_call_operand.hbm [shape: f32[1,8,128], index: 3, kind: output, shape index: {}]  }
   0x1   :  { %9 = vsyncpa [#allocation6], 0 }
   0x2   :  { %10 = vsyncpa [#allocation4], 0  ;;  %s279_s12 = smov [#allocation5]   ;;  %s280_s14 = smov [#allocation2]  }
   0x3   :  { %s27_s13 = sshll.u32 %s279_s12, 4  ;;  %s17_s15 = sshll.u32 %s280_s14, 4  ;;  %s28_s13 = int_to_ptr.vmem [resolvable:$true] %s27_s13  ;;  %s18_s15 = int_to_ptr.vmem [resolvable:$true] %s17_s15 }
   0x4   :  { %s185_s18 = scalar_lea.hbm %s363_s1, 64 }
   0x5   :  { %p186_p0 = scmp.ne.s32.totalorder %s363_s1, %s185_s18  ;;  %p189_p1 = scmp.lt.u32.totalorder %s185_s18, %s363_s1 }
   0x7   :  { %p191_p2 = pnand %p189_p1, %p186_p0 }
   0x9   :  { %194 = shalt.err (!%p191_p2)
}
   0xa   :  { %s195_s23 = scalar_lea.vmem %s28_s13, 64  ;;  %p200_p4 = scmp.lt.s32.totalorder %s28_s13, %s28_s13 }
   0xb   :  { %p196_p3 = scmp.ne.s32.totalorder %s28_s13, %s195_s23  ;;  %p201_p5 = scmp.lt.s32.totalorder %s195_s23, %s195_s23 }
   0xd   :  { %p202_p6 = por %p201_p5, %p200_p4 }
   0xf   :  { %p203_p7 = pnand %p202_p6, %p196_p3 }
  0x11   :  { %206 = shalt.err (!%p203_p7)
}
  0x12   :  { %30 = dma.hbm_to_vmem [thread:$0]  %s363_s1, 64, %s28_s13, [#allocation6]  }
  0x13   :  { %s207_s28 = scalar_lea.hbm %s362_s0, 64 }
  0x14   :  { %p208_p8 = scmp.ne.s32.totalorder %s362_s0, %s207_s28  ;;  %p211_p9 = scmp.lt.u32.totalorder %s207_s28, %s362_s0 }
  0x16   :  { %p213_p10 = pnand %p211_p9, %p208_p8 }
  0x18   :  { %216 = shalt.err (!%p213_p10)
}
  0x19   :  { %s217_s6 = scalar_lea.vmem %s18_s15, 64  ;;  %p222_p12 = scmp.lt.s32.totalorder %s18_s15, %s18_s15 }
  0x1a   :  { %p218_p11 = scmp.ne.s32.totalorder %s18_s15, %s217_s6  ;;  %p223_p13 = scmp.lt.s32.totalorder %s217_s6, %s217_s6 }
  0x1c   :  { %p224_p0 = por %p223_p13, %p222_p12 }
  0x1e   :  { %p225_p1 = pnand %p224_p0, %p218_p11 }
  0x20   :  { %228 = shalt.err (!%p225_p1)
}
  0x21   :  { %20 = dma.hbm_to_vmem [thread:$0]  %s362_s0, 64, %s18_s15, [#allocation3]  }
  0x22   :  { %s281_s8 = smov [#allocation7]   ;;  %s229_s12 = scalar_lea.hbm %s364_s2, 192 }
  0x23   :  { %s36_s9 = sshll.u32 %s281_s8, 4  ;;  %p230_p2 = scmp.ne.s32.totalorder %s364_s2, %s229_s12  ;;  %s37_s9 = int_to_ptr.vmem [resolvable:$true] %s36_s9 }
  0x24   :  { %p233_p3 = scmp.lt.u32.totalorder %s229_s12, %s364_s2 }
  0x26   :  { %p235_p4 = pnand %p233_p3, %p230_p2 }
  0x28   :  { %238 = shalt.err (!%p235_p4)
}
  0x29   :  { %s239_s18 = scalar_lea.vmem %s37_s9, 192  ;;  %p244_p6 = scmp.lt.s32.totalorder %s37_s9, %s37_s9 }
  0x2a   :  { %p240_p5 = scmp.ne.s32.totalorder %s37_s9, %s239_s18  ;;  %p245_p7 = scmp.lt.s32.totalorder %s239_s18, %s239_s18 }
  0x2c   :  { %p246_p8 = por %p245_p7, %p244_p6 }
  0x2e   :  { %p247_p9 = pnand %p246_p8, %p240_p5 }
  0x30   :  { %250 = shalt.err (!%p247_p9)
}
  0x31   :  { %s282_s0 = smov 64   ;;  %s283_s15 = smov 4  }
  0x32   :  { %42 = dma.hbm_to_vmem [thread:$0]  %s364_s2, 192, %s37_s9, [#allocation6], %s282_s0, %s282_s0, %s283_s15  }
  0x33   :  { %273 = dma.done.wait [#allocation3], 64  }
  0x34   :  { %274 = vsyncadd [#allocation3], 4294967232 }
  0x35   :  { %275 = dma.done.wait [#allocation6], 256  }
  0x36   :  { %276 = vsyncadd [#allocation6], 4294967040  ;;  %vm54_vm0 = vcmask 257024   ;;  %v75_v0 = vld [vmem:[#allocation7] sm:$0xf]  ;;  %vm128_vm1 = vcmask 3072  }
  0x37   :  { %v52_v1 = vld [vmem:[#allocation2] sm:$0xf]  ;;  %v92_v2 = vld [vmem:[#allocation7 + $0x4] sm:$0xf]  ;;  %v76_v3 = vmul.f32 %v75_v0, %v75_v0  ;;  %v60_v6 = vld [vmem:[#allocation5] sm:$0xf] }
  0x38   :  { %v53_v4 = vmul.f32 %v52_v1, %v52_v1  ;;  %v93_v5 = vmul.f32 %v92_v2, %v92_v2  ;;  %v61_v7 = vmul.f32 %v60_v6, %v60_v6  ;;  %v109_v8 = vld [vmem:[#allocation7 + $0x8] sm:$0xf]  ;;  %v67_v14 = vmul.f32 %v60_v6, %v52_v1  ;;  %s284_s2 = smov [#allocation8]  }
  0x39   :  { %v77_v9 = vsel %vm54_vm0, %v76_v3, 0.0  ;;  %v110_v13 = vmul.f32 %v109_v8, %v109_v8  ;;  %v82_v17 = vmul.f32 %v75_v0, %v52_v1  ;;  %v99_v18 = vmul.f32 %v92_v2, %v52_v1  ;;  %s147_s21 = sshll.u32 %s284_s2, 4  ;;  %s148_s21 = int_to_ptr.vmem [resolvable:$true] %s147_s21 }
  0x3a   :  { %v55_v10 = vsel %vm54_vm0, %v53_v4, 0.0  ;;  %78 = vadd.xlane.f32.xlu1 %v77_v9  ;;  %v94_v11 = vsel %vm54_vm0, %v93_v5, 0.0  ;;  %v62_v12 = vsel %vm54_vm0, %v61_v7, 0.0  ;;  %v68_v16 = vsel %vm54_vm0, %v67_v14, 0.0  ;;  %s251_s23 = scalar_lea.vmem %s148_s21, 128  ;;  %p256_p11 = scmp.lt.s32.totalorder %s148_s21, %s148_s21 }
  0x3b   :  { %56 = vadd.xlane.f32.xlu0 %v55_v10  ;;  %v111_v15 = vsel %vm54_vm0, %v110_v13, 0.0  ;;  %v83_v19 = vsel %vm54_vm0, %v82_v17, 0.0  ;;  %v100_v20 = vsel %vm54_vm0, %v99_v18, 0.0  ;;  %v116_v21 = vmul.f32 %v109_v8, %v52_v1  ;;  %p252_p10 = scmp.ne.s32.totalorder %s148_s21, %s251_s23  ;;  %p257_p12 = scmp.lt.s32.totalorder %s251_s23, %s251_s23 }
  0x3d   :  { %v117_v22 = vsel %vm54_vm0, %v116_v21, 0.0  ;;  %p258_p13 = por %p257_p12, %p256_p11 }
  0x3e   :  { %95 = vadd.xlane.f32.xlu1 %v94_v11 }
  0x3f   :  { %63 = vadd.xlane.f32.xlu0 %v62_v12  ;;  %p259_p0 = pnand %p258_p13, %p252_p10 }
  0x42   :  { %69 = vadd.xlane.f32.xlu1 %v68_v16 }
  0x43   :  { %112 = vadd.xlane.f32.xlu0 %v111_v15 }
  0x46   :  { %101 = vadd.xlane.f32.xlu1 %v100_v20 }
  0x47   :  { %84 = vadd.xlane.f32.xlu0 %v83_v19 }
  0x4b   :  { %118 = vadd.xlane.f32.xlu0 %v117_v22 }
  0xc7   :  { %v79_v23 = vpop.xlane.xlu1 %78 }
  0xc8   :  { %v57_v24 = vpop.xlane.xlu0 %56  ;;  %v80_v25 = vmax.f32 %v79_v23, 1e-24 }
  0xc9   :  { %v58_v26 = vmax.f32 %v57_v24, 1e-24 }
  0xca   :  { %165 = vrsqrt.f32 %v80_v25 }
  0xcb   :  { %167 = vrsqrt.f32 %v58_v26  ;;  %v96_v27 = vpop.xlane.xlu1 %95 }
  0xcc   :  { %v64_v28 = vpop.xlane.xlu0 %63  ;;  %v97_v29 = vmax.f32 %v96_v27, 1e-24 }
  0xcd   :  { %v65_v30 = vmax.f32 %v64_v28, 1e-24 }
  0xce   :  { %169 = vrsqrt.f32 %v97_v29 }
  0xcf   :  { %171 = vrsqrt.f32 %v65_v30  ;;  %v70_v32 = vpop.xlane.xlu1 %69 }
  0xd0   :  { %v113_v31 = vpop.xlane.xlu0 %112 }
  0xd1   :  { %v114_v33 = vmax.f32 %v113_v31, 1e-24 }
  0xd3   :  { %173 = vrsqrt.f32 %v114_v33  ;;  %v102_v36 = vpop.xlane.xlu1 %101 }
  0xd4   :  { %v85_v34 = vpop.xlane.xlu0 %84  ;;  %v166_v35 = vpop.eup %165 }
  0xd5   :  { %v168_v37 = vpop.eup %167 }
  0xd6   :  { %v86_v38 = vmul.f32 %v168_v37, %v85_v34  ;;  %v103_v39 = vmul.f32 %v168_v37, %v102_v36  ;;  %v71_v41 = vmul.f32 %v168_v37, %v70_v32 }
  0xd8   :  { %v170_v40 = vpop.eup %169  ;;  %v87_v42 = vmul.f32 %v166_v35, %v86_v38  ;;  %v119_v43 = vpop.xlane.xlu0 %118 }
  0xd9   :  { %v172_v44 = vpop.eup %171  ;;  %v104_v45 = vmul.f32 %v170_v40, %v103_v39  ;;  %v120_v48 = vmul.f32 %v168_v37, %v119_v43 }
  0xda   :  { %v72_v46 = vmul.f32 %v172_v44, %v71_v41  ;;  %v88_v47 = vmul.f32 1.442695, %v87_v42 }
  0xdb   :  { %v105_v51 = vmul.f32 1.442695, %v104_v45 }
  0xdc   :  { %v73_v50 = vmul.f32 1.442695, %v72_v46  ;;  %175 = vpow2.f32 %v88_v47 }
  0xdd   :  { %v174_v49 = vpop.eup %173 }
  0xde   :  { %v121_v52 = vmul.f32 %v174_v49, %v120_v48  ;;  %177 = vpow2.f32 %v73_v50 }
  0xdf   :  { %179 = vpow2.f32 %v105_v51 }
  0xe0   :  { %v122_v53 = vmul.f32 1.442695, %v121_v52 }
  0xe2   :  { %181 = vpow2.f32 %v122_v53 }
  0xe6   :  { %v176_v54 = vpop.eup %175 }
  0xe8   :  { %v178_v55 = vpop.eup %177 }
  0xe9   :  { %v90_v56 = vadd.f32 %v178_v55, %v176_v54  ;;  %v180_v57 = vpop.eup %179 }
  0xeb   :  { %v107_v59 = vadd.f32 %v180_v57, %v90_v56 }
  0xec   :  { %v182_v58 = vpop.eup %181 }
  0xed   :  { %v124_v60 = vadd.f32 %v182_v58, %v107_v59 }
  0xef   :  { %183 = vlog2.f32 %v124_v60 }
  0xf9   :  { %v184_v61 = vpop.eup %183 }
  0xfa   :  { %v126_v62 = vmul.f32 0.6931472, %v184_v61 }
  0xfc   :  { %v127_v63 = vsub.f32 %v126_v62, %v72_v46 }
  0xfe   :  { %v129_v0 = vsel %vm128_vm1, %v127_v63, 0.0 }
  0xff   :  { %130 = vadd.xlane.f32.xlu1 %v129_v0 }
 0x18c   :  { %v131_v1 = vpop.xlane.xlu1 %130 }
 0x18d   :  { %v132_v2 = vrot.slane %v131_v1, 4 }
 0x18f   :  { %v133_v3 = vadd.f32 %v132_v2, %v131_v1 }
 0x191   :  { %v134_v4 = vrot.slane %v133_v3, 2 }
 0x193   :  { %v135_v5 = vadd.f32 %v134_v4, %v133_v3 }
 0x195   :  { %v136_v6 = vrot.slane %v135_v5, 1 }
 0x197   :  { %v137_v7 = vadd.f32 %v136_v6, %v135_v5 }
 0x199   :  { %157 = vpush %v137_v7 }
 0x1ca   :  { %s158_s22 = spop %157 }
 0x1cb   :  { %v139_v8 = vstv %s158_s22 }
 0x1cc   :  { %140 = vst [vmem:[#allocation8] sm:$0xff] %v139_v8 }
 0x1cd   :  { %262 = shalt.err (!%p259_p0)
}
 0x1ce   :  { %s263_s26 = scalar_lea.hbm %s365_s3, 128 }
 0x1cf   :  { %p264_p1 = scmp.ne.s32.totalorder %s365_s3, %s263_s26  ;;  %p267_p2 = scmp.lt.u32.totalorder %s263_s26, %s365_s3 }
 0x1d1   :  { %p269_p3 = pnand %p267_p2, %p264_p1 }
 0x1d3   :  { %272 = shalt.err (!%p269_p3)
}
 0x1d4   :  { %150 = dma.vmem_to_hbm [thread:$0]  %s148_s21, 128, %s365_s3, [#allocation4]  }
 0x1d5   :  { %277 = dma.done.wait [#allocation4], 128  }
 0x1d6   :  { %278 = vsyncadd [#allocation4], 4294967168 }
 0x1d7   :  { %154 = vsyncpa [#allocation3], 1 }
 0x1d8   :  { %155 = vsyncpa [#allocation6], 1 }
 0x1d9   :  { %156 = vsyncpa [#allocation4], 1 }

</bundles_post_ra>
